<compile_context>
chip_gen: v6e
topology: v6e:2x2x1
jax: 0.10.0
libtpu: 0.0.40
codegen_flags: <defaults>
</compile_context>

<pallas_src>
import functools

import jax
import jax.numpy as jnp
from jax.experimental import pallas as pl
from jax.experimental.pallas import tpu as pltpu

LANES = 128
SUBLANES = 8

# 4096 rows x 128 lanes x 4 B = 2 MiB per buffer; in+out double-buffered = 8 MiB.
MAX_BLOCK_ROWS = 4096
# Below this many elements, skip pallas_call (launch-overhead bound) and let XLA fuse.
PALLAS_MIN_ELEMENTS = 1 << 20


def _smooth_ridge_kernel(params_ref, x_ref, out_ref, *, apply_clamp):
    """out = 1 / (exp(z) + 1),  z = ((x - shift)^2 - r2) * coeff  [clamped to max 10 if requested].

    params_ref: SMEM (3,) f32 = [shift, r2, coeff].
    apply_clamp: static bool (region is a Python string in the original module).
    """
    shift = params_ref[0]
    r2 = params_ref[1]
    coeff = params_ref[2]

    x = x_ref[...]
    d = x - shift                       # hoisted, used twice
    z = (d * d - r2) * coeff
    if apply_clamp:
        z = jnp.minimum(z, 10.0)        # torch.clamp(..., max=10)
    # Exact divide: kernel is HBM-bound, so the extra precision is wall-clock free and
    # matches the PyTorch 1/(exp(z)+1) (exp overflow -> inf -> out == 0, no NaNs).
    out_ref[...] = 1.0 / (jnp.exp(z) + 1.0)


def _region_params(center, width, sharpness, total_length, region):
    """Fold the region-specific algebra into (shift, r2, coeff) + static clamp flag."""
    L = jnp.float32(total_length)
    center = jnp.asarray(center, jnp.float32)
    width = jnp.asarray(width, jnp.float32)
    sharpness = jnp.asarray(sharpness, jnp.float32)

    if region == "left":
        w_left = L + center - width / 2
        shift = -L
        r2 = w_left * w_left
        coeff = -sharpness * (L / (3.0 * w_left)) ** 2
        apply_clamp = True
    elif region == "middle":
        half = width / 2
        shift = center
        r2 = half * half
        coeff = sharpness * (L / (3.0 * width)) ** 2
        apply_clamp = False
    elif region == "right":
        w_right = -center - width / 2
        shift = jnp.float32(0.0)
        r2 = w_right * w_right
        coeff = -sharpness * (L / (3.0 * w_right)) ** 2
        apply_clamp = True
    else:
        raise ValueError(f"unknown region: {region!r}")

    params = jnp.stack([jnp.asarray(shift, jnp.float32),
                        jnp.asarray(r2, jnp.float32),
                        jnp.asarray(coeff, jnp.float32)]).astype(jnp.float32)
    return params, apply_clamp


def _smooth_ridge_jnp(x, params, apply_clamp):
    """Fused plain-jnp path (small sizes / ragged tail)."""
    d = x - params[0]
    z = (d * d - params[1]) * params[2]
    if apply_clamp:
        z = jnp.minimum(z, 10.0)
    return 1.0 / (jnp.exp(z) + 1.0)


def _pick_block_rows(rows):
    """Largest VMEM-friendly row tile; even, balanced grid steps when tiling kicks in."""
    if rows <= MAX_BLOCK_ROWS:
        return rows                                   # full dim -> always a legal block
    n_blocks = pl.cdiv(rows, MAX_BLOCK_ROWS)
    if n_blocks % 2:                                  # even #steps -> both v7x TCs loaded
        n_blocks += 1
    block = pl.cdiv(rows, n_blocks)
    block = pl.cdiv(block, SUBLANES) * SUBLANES       # sublane-aligned per the (8,128) rule
    return min(block, MAX_BLOCK_ROWS)


def smooth_ridge_forward(x, center, width, sharpness, region, total_length,
                         *, use_pallas=None):
    """JAX/Pallas equivalent of SmoothRidge(total_length).forward(x, center, width, sharpness, region)."""
    x = jnp.asarray(x, jnp.float32)
    params, apply_clamp = _region_params(center, width, sharpness, total_length, region)

    orig_shape = x.shape
    n = int(x.size)
    if use_pallas is None:
        use_pallas = n >= PALLAS_MIN_ELEMENTS
    if (not use_pallas) or n < LANES:
        return _smooth_ridge_jnp(x, params, apply_clamp).reshape(orig_shape)

    flat = x.reshape(-1)                               # layout-preserving, no copy
    n_main = (n // LANES) * LANES
    main = flat[:n_main].reshape(-1, LANES)            # lane-dense slab -> unmasked vst
    rows = main.shape[0]

    block_rows = _pick_block_rows(rows)
    grid = (pl.cdiv(rows, block_rows),)

    kernel = functools.partial(_smooth_ridge_kernel, apply_clamp=apply_clamp)

    out_main = pl.pallas_call(
        kernel,
        out_shape=jax.ShapeDtypeStruct((rows, LANES), jnp.float32),
        grid=grid,
        in_specs=[
            pl.BlockSpec(memory_space=pltpu.SMEM),                # packed scalars
            pl.BlockSpec((block_rows, LANES), lambda i: (i, 0)),  # x tile
        ],
        out_specs=pl.BlockSpec((block_rows, LANES), lambda i: (i, 0)),
        compiler_params=pltpu.CompilerParams(
            dimension_semantics=("parallel",),
        ),
    )(params, main)

    out_flat = out_main.reshape(-1)
    if n_main != n:
        # <128-element ragged tail: cheap jnp epilogue instead of padding a copy of x.
        tail = _smooth_ridge_jnp(flat[n_main:], params, apply_clamp)
        out_flat = jnp.concatenate([out_flat, tail])
    return out_flat.reshape(orig_shape)


def _reference(x, center, width, sharpness, region, total_length):
    """Pure-JAX mirror of the PyTorch SmoothRidge.forward for validation."""
    x = jnp.asarray(x, jnp.float32)
    center = jnp.asarray(center, jnp.float32)
    width = jnp.asarray(width, jnp.float32)
    sharpness = jnp.asarray(sharpness, jnp.float32)
    L = jnp.float32(total_length)
    w_left = L + center - width / 2
    w_right = -center - width / 2
    if region == "left":
        z = jnp.minimum(
            -(((x + L) ** 2 - w_left ** 2) * sharpness) * (L / (3 * w_left)) ** 2, 10.0)
    elif region == "middle":
        z = ((x - center) ** 2 - (width / 2) ** 2) * sharpness * (L / (3 * width)) ** 2
    else:  # "right"
        z = jnp.minimum(
            -((x ** 2 - w_right ** 2) * sharpness) * (L / (3 * w_right)) ** 2, 10.0)
    return 1.0 / (jnp.exp(z) + 1.0)


if __name__ == "__main__":
    key = jax.random.PRNGKey(0)

    total_length = 1.0
    center = -0.3
    width = 0.2
    sharpness = 200.0   # large enough that the max=10 clamp is exercised

    # x: NCHW-like coordinate tensor spanning the ridge on both sides
    x = jax.random.uniform(key, (2, 4, 16, 16), dtype=jnp.float32,
                           minval=-1.0, maxval=1.0)

    # Force the Pallas path so the kernel itself is exercised at this toy size.
    for region in ("left", "middle", "right"):
        out = smooth_ridge_forward(x, center, width, sharpness, region,
                                   total_length, use_pallas=True)
        out = jax.block_until_ready(out)
        ref = _reference(x, center, width, sharpness, region, total_length)
        assert out.shape == x.shape and out.dtype == jnp.float32
        assert jnp.allclose(out, ref, atol=1e-5, rtol=1e-5), region

    # Misaligned size exercises the aligned-prefix + jnp-tail path (1000 = 7*128 + 104).
    x_tail = jax.random.uniform(jax.random.PRNGKey(1), (1000,), dtype=jnp.float32,
                                minval=-1.0, maxval=1.0)
    out_t = jax.block_until_ready(
        smooth_ridge_forward(x_tail, center, width, sharpness, "left",
                             total_length, use_pallas=True))
    ref_t = _reference(x_tail, center, width, sharpness, "left", total_length)
    assert jnp.allclose(out_t, ref_t, atol=1e-5, rtol=1e-5)

    # Auto dispatch (small size -> fused jnp fallback) sanity check.
    out_auto = jax.block_until_ready(
        smooth_ridge_forward(x, center, width, sharpness, "middle", total_length))
    ref_auto = _reference(x, center, width, sharpness, "middle", total_length)
    assert jnp.allclose(out_auto, ref_auto, atol=1e-5, rtol=1e-5)

    print("KERNEL_OK")
</pallas_src>

<mosaic_0001>
module attributes {stable_mosaic.version = 11 : i64} {
  func.func @_smooth_ridge_kernel(%arg0: i32, %arg1: memref<3xf32, #tpu.memory_space<smem>>, %arg2: memref<16x128xf32, #tpu.memory_space<vmem>>, %arg3: memref<16x128xf32, #tpu.memory_space<vmem>>) attributes {dimension_semantics = [#tpu.dimension_semantics<parallel>], iteration_bounds = array<i64: 1>, scalar_prefetch = 0 : i64, scratch_operands = 0 : i64, tpu.core_type = #tpu.core_type<tc>, window_params = [{transform_indices = @transform_0, window_bounds = array<i64: 3>}, {transform_indices = @transform_1, window_bounds = array<i64: 16, 128>}, {transform_indices = @transform_2, window_bounds = array<i64: 16, 128>}]} {
    %c0 = arith.constant 0 : index
    %0 = memref.load %arg1[%c0] : memref<3xf32, #tpu.memory_space<smem>>
    %c1 = arith.constant 1 : index
    %1 = memref.load %arg1[%c1] : memref<3xf32, #tpu.memory_space<smem>>
    %c2 = arith.constant 2 : index
    %2 = memref.load %arg1[%c2] : memref<3xf32, #tpu.memory_space<smem>>
    %c0_0 = arith.constant 0 : index
    %c0_1 = arith.constant 0 : index
    %3 = vector.load %arg2[%c0_0, %c0_1] : memref<16x128xf32, #tpu.memory_space<vmem>>, vector<16x128xf32>
    %4 = vector.broadcast %0 : f32 to vector<16x128xf32>
    %5 = arith.subf %3, %4 : vector<16x128xf32>
    %6 = arith.mulf %5, %5 : vector<16x128xf32>
    %7 = vector.broadcast %1 : f32 to vector<16x128xf32>
    %8 = arith.subf %6, %7 : vector<16x128xf32>
    %9 = vector.broadcast %2 : f32 to vector<16x128xf32>
    %10 = arith.mulf %8, %9 : vector<16x128xf32>
    %cst = arith.constant 1.000000e+01 : f32
    %11 = vector.broadcast %cst : f32 to vector<16x128xf32>
    %12 = arith.minimumf %10, %11 : vector<16x128xf32>
    %13 = math.exp %12 : vector<16x128xf32>
    %cst_2 = arith.constant 1.000000e+00 : f32
    %14 = vector.broadcast %cst_2 : f32 to vector<16x128xf32>
    %15 = arith.addf %13, %14 : vector<16x128xf32>
    %cst_3 = arith.constant 1.000000e+00 : f32
    %16 = vector.broadcast %cst_3 : f32 to vector<16x128xf32>
    %17 = arith.divf %16, %15 : vector<16x128xf32>
    %c0_4 = arith.constant 0 : index
    %c0_5 = arith.constant 0 : index
    %18 = vector.load %arg3[%c0_4, %c0_5] : memref<16x128xf32, #tpu.memory_space<vmem>>, vector<16x128xf32>
    tpu.vector_store %arg3[%c0_4, %c0_5], %17 {strides = array<i32>} : memref<16x128xf32, #tpu.memory_space<vmem>>, vector<16x128xf32>,
    return
  }
  func.func @transform_0(%arg0: i32) -> i32 {
    %c0_i32 = arith.constant 0 : i32
    %c0_i32_0 = arith.constant 0 : i32
    return %c0_i32 : i32
  }
  func.func @transform_1(%arg0: i32) -> (i32, i32) {
    %c0_i32 = arith.constant 0 : i32
    %c0_i32_0 = arith.constant 0 : i32
    return %arg0, %c0_i32 : i32, i32
  }
  func.func @transform_2(%arg0: i32) -> (i32, i32) {
    %c0_i32 = arith.constant 0 : i32
    %c0_i32_0 = arith.constant 0 : i32
    return %arg0, %c0_i32 : i32, i32
  }
}

</mosaic_0001>

<bundles_post_ra>
// kernel: tpu_custom_call.1
= control target key start
LH: loop header
LB: loop body
LE: loop exit
PB: predicated region body
PF: predicated region fallthrough
CT: control target
= control target key end

     0   :  { %7 = vsyncpa [#allocation5], 0  ;;  %s189_s0 = inlined_call_operand.hbm [shape: f32[3], index: 0, kind: input, shape index: {}]   ;;  %s190_s1 = inlined_call_operand.hbm [shape: f32[16,128], index: 1, kind: input, shape index: {}]   ;;  %s191_s2 = inlined_call_operand.hbm [shape: f32[16,128], index: 2, kind: output, shape index: {}]  }
   0x1   :  { %8 = vsyncpa [#allocation3], 0 }
   0x2   :  { %9 = vsyncpa [#allocation4], 0  ;;  %s154_s9 = smov [#allocation2]   ;;  %s155_s12 = smov [#allocation6]  }
   0x3   :  { %17 = dma.hbm_to_smem %s189_s0, 16, %s154_s9, [#allocation5]  }
   0x4   :  { %s23_s13 = sshll.u32 %s155_s12, 4  ;;  %s24_s13 = int_to_ptr.vmem [resolvable:$true] %s23_s13 }
   0x5   :  { %s116_s14 = scalar_lea.vmem %s24_s13, 256  ;;  %p121_p1 = scmp.lt.s32.totalorder %s24_s13, %s24_s13 }
   0x6   :  { %p117_p0 = scmp.ne.s32.totalorder %s24_s13, %s116_s14  ;;  %p122_p2 = scmp.lt.s32.totalorder %s116_s14, %s116_s14 }
   0x8   :  { %p123_p3 = por %p122_p2, %p121_p1 }
   0xa   :  { %p124_p4 = pnand %p123_p3, %p117_p0 }
   0xc   :  { %127 = shalt.err (!%p124_p4)
}
   0xd   :  { %s156_s15 = smov 128   ;;  %s157_s16 = smov 8  }
   0xe   :  { %29 = dma.hbm_to_vmem [thread:$0]  %s190_s1, 256, %s24_s13, [#allocation3], %s156_s15, %s156_s15, %s157_s16  }
   0xf   :  { %148 = dma.done.wait [#allocation5], 16  }
  0x10   :  { %149 = vsyncadd [#allocation5], 4294967280 }
  0x11   :  { %150 = dma.done.wait [#allocation3], 256  }
  0x12   :  { %151 = vsyncadd [#allocation3], 4294967040 }
  0x13   :  { %36 = sfence }
  0x14   :  { %s37_s0 = sld [smem:[#allocation2]]  ;;  %v40_v0 = vld [vmem:[#allocation6] sm:$0xff]  ;;  %v41_v1 = vld [vmem:[#allocation6 + $0x8] sm:$0xff]  ;;  %s158_s1 = smov [#allocation7]  }
  0x15   :  { %s85_s19 = sld [smem:[#allocation2 + $0x1]]  ;;  %s72_s21 = sshll.u32 %s158_s1, 4  ;;  %s73_s21 = int_to_ptr.vmem [resolvable:$true] %s72_s21 }
  0x16   :  { %s86_s20 = sld [smem:[#allocation2 + $0x2]]  ;;  %s128_s22 = scalar_lea.vmem %s73_s21, 256 }
  0x17   :  { %p129_p5 = scmp.ne.s32.totalorder %s73_s21, %s128_s22  ;;  %p133_p6 = scmp.lt.s32.totalorder %s73_s21, %s73_s21 }
  0x18   :  { %p134_p7 = scmp.lt.s32.totalorder %s128_s22, %s128_s22 }
  0x1a   :  { %v42_v2 = vstv %s37_s0  ;;  %p135_p8 = por %p134_p7, %p133_p6 }
  0x1b   :  { %v43_v3 = vsub.f32 %v40_v0, %v42_v2  ;;  %v44_v4 = vsub.f32 %v41_v1, %v42_v2  ;;  %v47_v5 = vstv %s85_s19 }
  0x1c   :  { %v50_v8 = vstv %s86_s20  ;;  %p136_p9 = pnand %p135_p8, %p129_p5 }
  0x1d   :  { %v45_v6 = vmul.f32 %v43_v3, %v43_v3  ;;  %v46_v7 = vmul.f32 %v44_v4, %v44_v4 }
  0x1f   :  { %v48_v9 = vsub.f32 %v45_v6, %v47_v5  ;;  %v49_v10 = vsub.f32 %v46_v7, %v47_v5 }
  0x21   :  { %v51_v11 = vmul.f32 %v50_v8, %v48_v9  ;;  %v52_v12 = vmul.f32 %v50_v8, %v49_v10 }
  0x23   :  { %v53_v13 = vmin.f32 %v51_v11, 10.0  ;;  %v54_v14 = vmin.f32 %v52_v12, 10.0 }
  0x25   :  { %v55_v15 = vmul.f32 1.442695, %v53_v13  ;;  %v57_v16 = vmul.f32 1.442695, %v54_v14 }
  0x27   :  { %92 = vpow2.f32 %v55_v15 }
  0x28   :  { %94 = vpow2.f32 %v57_v16 }
  0x34   :  { %v93_v17 = vpop.eup %92 }
  0x35   :  { %v95_v18 = vpop.eup %94  ;;  %v59_v19 = vadd.f32 1.0, %v93_v17 }
  0x36   :  { %v60_v20 = vadd.f32 1.0, %v95_v18 }
  0x37   :  { %96 = vrcp.f32 %v59_v19 }
  0x38   :  { %98 = vrcp.f32 %v60_v20 }
  0x44   :  { %v97_v21 = vpop.eup %96 }
  0x45   :  { %v99_v22 = vpop.eup %98  ;;  %65 = vst [vmem:[#allocation7] sm:$0xff] %v97_v21 }
  0x46   :  { %66 = vst [vmem:[#allocation7 + $0x8] sm:$0xff] %v99_v22 }
  0x47   :  { %139 = shalt.err (!%p136_p9)
}
  0x48   :  { %78 = dma.vmem_to_hbm [thread:$0]  %s73_s21, 256, %s191_s2, [#allocation4], %s156_s15, %s156_s15, %s157_s16  }
  0x49   :  { %152 = dma.done.wait [#allocation4], 256  }
  0x4a   :  { %153 = vsyncadd [#allocation4], 4294967040 }
  0x4b   :  { %82 = vsyncpa [#allocation3], 1 }
  0x4c   :  { %83 = vsyncpa [#allocation4], 1 }
  0x4d   :  { %84 = vsyncpa [#allocation5], 1 }

</bundles_post_ra>
